<compile_context>
chip_gen: v7x
topology: tpu7x:2x2x1
jax: 0.10.0
libtpu: 0.0.40
codegen_flags: <defaults>
</compile_context>

<pallas_src>
import functools

import jax
import jax.numpy as jnp
from jax.experimental import pallas as pl
from jax.experimental.pallas import tpu as pltpu


def _round_up(n: int, m: int) -> int:
    return ((n + m - 1) // m) * m


# ----------------------------------------------------------------------------
# Deterministic parameter init (mirrors weight_init for nn.Linear):
#   orthogonal weight, zero bias.
# ----------------------------------------------------------------------------
def orthogonal(key, out_dim, in_dim, dtype=jnp.float32):
    """Orthogonal init like torch.nn.init.orthogonal_ (gain=1), shape (out, in)."""
    rows, cols = out_dim, in_dim
    transpose = rows < cols
    shape = (cols, rows) if transpose else (rows, cols)
    a = jax.random.normal(key, shape, dtype=jnp.float32)
    q, r = jnp.linalg.qr(a)
    d = jnp.sign(jnp.diagonal(r))
    d = jnp.where(d == 0, 1.0, d)  # avoid zeroing a column in the degenerate case
    q = q * d[None, :]
    if transpose:
        q = q.T
    return q.astype(dtype)  # (out_dim, in_dim)


# ----------------------------------------------------------------------------
# Kernel: one batch tile through the whole 3-layer MLP.
#   x_ref  : (TB, D)        input tile (param dtype)
#   w1_ref : (D, Hp)        layer-1 weight, lane-padded hidden
#   w2_ref : (Hp, Hp)       layer-2 weight
#   w3_ref : (Hp, Ap)       layer-3 weight, lane-padded output
#   b_ref  : (3, Wmax) f32  stacked biases [b1 | b2 | b3], zero-padded
#   o_ref  : (TB, Ap) f32   lane-dense output tile
# ----------------------------------------------------------------------------
def actor_kernel(x_ref, w1_ref, w2_ref, w3_ref, b_ref, o_ref, *, max_action):
    hp = w1_ref.shape[1]
    ap = w3_ref.shape[1]

    b1 = b_ref[0:1, :hp]
    b2 = b_ref[1:2, :hp]
    b3 = b_ref[2:3, :ap]

    h1 = jnp.dot(x_ref[...], w1_ref[...],
                 preferred_element_type=jnp.float32) + b1
    h1 = jnp.maximum(h1, 0.0)

    h2 = jnp.dot(h1.astype(w2_ref.dtype), w2_ref[...],
                 preferred_element_type=jnp.float32) + b2
    h2 = jnp.maximum(h2, 0.0)

    a = jnp.dot(h2.astype(w3_ref.dtype), w3_ref[...],
                preferred_element_type=jnp.float32) + b3
    o_ref[...] = (max_action * jnp.tanh(a)).astype(o_ref.dtype)


def actor_forward(x, params, max_action, *, block_batch=256):
    """x: (B, state_features_dim). Returns (B, action_dim) float32."""
    w1, b1, w2, b2, w3, b3 = params
    B, D = x.shape
    H = w1.shape[1]
    A = w3.shape[1]

    dtype = w1.dtype                      # f32 (v5e) or bf16 (v6e/v7x bandwidth)
    Hp = _round_up(H, 128)
    Ap = _round_up(A, 128)
    Wmax = max(Hp, Ap)

    # Zero-pad weights to lane-dense shapes (mathematically exact).
    w1p = jnp.zeros((D, Hp), dtype).at[:, :H].set(w1.astype(dtype))
    w2p = jnp.zeros((Hp, Hp), dtype).at[:H, :H].set(w2.astype(dtype))
    w3p = jnp.zeros((Hp, Ap), dtype).at[:H, :A].set(w3.astype(dtype))

    # Stack biases into one small resident VMEM tile.
    bias = jnp.zeros((3, Wmax), jnp.float32)
    bias = bias.at[0, :H].set(jnp.reshape(b1, (-1,)).astype(jnp.float32))
    bias = bias.at[1, :H].set(jnp.reshape(b2, (-1,)).astype(jnp.float32))
    bias = bias.at[2, :A].set(jnp.reshape(b3, (-1,)).astype(jnp.float32))

    xc = x.astype(dtype)

    # Batch tile: multiple of 8 sublanes, capped so (x + out) double-buffers
    # plus resident weights stay far under even v7x's 64 MiB VMEM.
    TB = max(8, min(int(block_batch), _round_up(B, 8)))
    grid = (pl.cdiv(B, TB),)

    cost = pl.CostEstimate(
        flops=int(2 * B * (D * H + H * H + H * A)),
        transcendentals=int(B * A),
        bytes_accessed=int(
            xc.size * xc.dtype.itemsize
            + B * Ap * 4
            + (w1p.size + w2p.size + w3p.size) * jnp.dtype(dtype).itemsize
            + bias.size * 4
        ),
    )

    kernel = functools.partial(actor_kernel, max_action=float(max_action))

    out = pl.pallas_call(
        kernel,
        out_shape=jax.ShapeDtypeStruct((B, Ap), jnp.float32),
        grid=grid,
        in_specs=[
            pl.BlockSpec((TB, D), lambda i: (i, 0)),       # x: tiled on batch
            pl.BlockSpec((D, Hp), lambda i: (0, 0)),       # w1: resident
            pl.BlockSpec((Hp, Hp), lambda i: (0, 0)),      # w2: resident
            pl.BlockSpec((Hp, Ap), lambda i: (0, 0)),      # w3: resident
            pl.BlockSpec((3, Wmax), lambda i: (0, 0)),     # biases: resident
        ],
        out_specs=pl.BlockSpec((TB, Ap), lambda i: (i, 0)),  # lane-dense output
        compiler_params=pltpu.CompilerParams(
            dimension_semantics=("parallel",)),
        cost_estimate=cost,
    )(xc, w1p, w2p, w3p, bias)

    return out[:, :A]


# ----------------------------------------------------------------------------
# Pure-JAX reference for correctness checking.
# ----------------------------------------------------------------------------
def actor_ref(x, params, max_action):
    w1, b1, w2, b2, w3, b3 = params
    a = jax.nn.relu(x @ w1 + b1)
    a = jax.nn.relu(a @ w2 + b2)
    return max_action * jnp.tanh(a @ w3 + b3)


if __name__ == "__main__":
    # Small shapes consistent with Actor.forward.
    state_features_dim = 16
    hidden_dim = 32
    action_dim = 8
    max_action = 1.0

    root = jax.random.PRNGKey(0)
    k_x, k_x2, k1, k2, k3 = jax.random.split(root, 5)

    # nn.Linear weight is (out, in); pre-transpose to (in, out) for x @ W.
    w1 = orthogonal(k1, hidden_dim, state_features_dim).T   # (D, H)
    w2 = orthogonal(k2, hidden_dim, hidden_dim).T            # (H, H)
    w3 = orthogonal(k3, action_dim, hidden_dim).T            # (H, A)
    b1 = jnp.zeros((hidden_dim,), jnp.float32)
    b2 = jnp.zeros((hidden_dim,), jnp.float32)
    b3 = jnp.zeros((action_dim,), jnp.float32)
    params = (w1, b1, w2, b2, w3, b3)

    # --- tiny batch (single-env action selection path) -----------------------
    x_small = jax.random.normal(k_x, (2, state_features_dim), jnp.float32)
    out_small = jax.block_until_ready(actor_forward(x_small, params, max_action))
    ref_small = actor_ref(x_small, params, max_action)
    assert out_small.shape == (2, action_dim)
    assert jnp.allclose(out_small, ref_small, atol=1e-5, rtol=1e-5), "small-batch mismatch"

    # --- larger batch: exercises the batch grid (4 tiles, last one partial) --
    x_big = jax.random.normal(k_x2, (200, state_features_dim), jnp.float32)
    out_big = jax.block_until_ready(
        actor_forward(x_big, params, max_action, block_batch=64))
    ref_big = actor_ref(x_big, params, max_action)
    assert out_big.shape == (200, action_dim)
    assert jnp.allclose(out_big, ref_big, atol=1e-4, rtol=1e-4), "big-batch mismatch"

    # --- bf16 weights/activations path (v6e/v7x bandwidth option) ------------
    params_bf16 = tuple(p.astype(jnp.bfloat16) if p.ndim == 2 else p for p in params)
    out_bf16 = jax.block_until_ready(
        actor_forward(x_big, params_bf16, max_action, block_batch=64))
    assert out_bf16.shape == (200, action_dim)
    assert jnp.allclose(out_bf16, ref_big, atol=1e-1, rtol=1e-1), "bf16 path mismatch"

    print("KERNEL_OK")
</pallas_src>

<mosaic_0001>
module attributes {stable_mosaic.version = 11 : i64} {
  func.func @actor_kernel(%arg0: i32, %arg1: memref<8x16xf32, #tpu.memory_space<vmem>>, %arg2: memref<16x128xf32, #tpu.memory_space<vmem>>, %arg3: memref<128x128xf32, #tpu.memory_space<vmem>>, %arg4: memref<128x128xf32, #tpu.memory_space<vmem>>, %arg5: memref<3x128xf32, #tpu.memory_space<vmem>>, %arg6: memref<8x128xf32, #tpu.memory_space<vmem>>) attributes {dimension_semantics = [#tpu.dimension_semantics<parallel>], iteration_bounds = array<i64: 1>, scalar_prefetch = 0 : i64, scratch_operands = 0 : i64, tpu.core_type = #tpu.core_type<tc>, window_params = [{transform_indices = @transform_0, window_bounds = array<i64: 8, 16>}, {pipeline_mode = #tpu.pipeline_mode<synchronous>, transform_indices = @transform_1, window_bounds = array<i64: 16, 128>}, {pipeline_mode = #tpu.pipeline_mode<synchronous>, transform_indices = @transform_2, window_bounds = array<i64: 128, 128>}, {pipeline_mode = #tpu.pipeline_mode<synchronous>, transform_indices = @transform_3, window_bounds = array<i64: 128, 128>}, {pipeline_mode = #tpu.pipeline_mode<synchronous>, transform_indices = @transform_4, window_bounds = array<i64: 3, 128>}, {transform_indices = @transform_5, window_bounds = array<i64: 8, 128>}]} {
    %c0 = arith.constant 0 : index
    %c0_0 = arith.constant 0 : index
    %0 = vector.load %arg5[%c0, %c0_0] : memref<3x128xf32, #tpu.memory_space<vmem>>, vector<1x128xf32>
    %c1 = arith.constant 1 : index
    %c0_1 = arith.constant 0 : index
    %1 = vector.load %arg5[%c1, %c0_1] : memref<3x128xf32, #tpu.memory_space<vmem>>, vector<1x128xf32>
    %c2 = arith.constant 2 : index
    %c0_2 = arith.constant 0 : index
    %2 = vector.load %arg5[%c2, %c0_2] : memref<3x128xf32, #tpu.memory_space<vmem>>, vector<1x128xf32>
    %c0_3 = arith.constant 0 : index
    %c0_4 = arith.constant 0 : index
    %3 = vector.load %arg1[%c0_3, %c0_4] : memref<8x16xf32, #tpu.memory_space<vmem>>, vector<8x16xf32>
    %c0_5 = arith.constant 0 : index
    %c0_6 = arith.constant 0 : index
    %4 = vector.load %arg2[%c0_5, %c0_6] : memref<16x128xf32, #tpu.memory_space<vmem>>, vector<16x128xf32>
    %cst = arith.constant dense<0.000000e+00> : vector<8x128xf32>
    %5 = tpu.matmul %3, %4, %cst {dimension_numbers = #tpu.dot_dimension_numbers<[1], [0], [0], [1], [0, 0, 1, 1], [], []>} : vector<8x16xf32>, vector<16x128xf32>, vector<8x128xf32> -> vector<8x128xf32>
    %6 = vector.broadcast %0 : vector<1x128xf32> to vector<8x128xf32>
    %7 = arith.addf %5, %6 : vector<8x128xf32>
    %cst_7 = arith.constant 0.000000e+00 : f32
    %8 = vector.broadcast %cst_7 : f32 to vector<8x128xf32>
    %9 = arith.maximumf %7, %8 : vector<8x128xf32>
    %c0_8 = arith.constant 0 : index
    %c0_9 = arith.constant 0 : index
    %10 = vector.load %arg3[%c0_8, %c0_9] : memref<128x128xf32, #tpu.memory_space<vmem>>, vector<128x128xf32>
    %cst_10 = arith.constant dense<0.000000e+00> : vector<8x128xf32>
    %11 = tpu.matmul %9, %10, %cst_10 {dimension_numbers = #tpu.dot_dimension_numbers<[1], [0], [0], [1], [0, 0, 1, 1], [], []>} : vector<8x128xf32>, vector<128x128xf32>, vector<8x128xf32> -> vector<8x128xf32>
    %12 = vector.broadcast %1 : vector<1x128xf32> to vector<8x128xf32>
    %13 = arith.addf %11, %12 : vector<8x128xf32>
    %cst_11 = arith.constant 0.000000e+00 : f32
    %14 = vector.broadcast %cst_11 : f32 to vector<8x128xf32>
    %15 = arith.maximumf %13, %14 : vector<8x128xf32>
    %c0_12 = arith.constant 0 : index
    %c0_13 = arith.constant 0 : index
    %16 = vector.load %arg4[%c0_12, %c0_13] : memref<128x128xf32, #tpu.memory_space<vmem>>, vector<128x128xf32>
    %cst_14 = arith.constant dense<0.000000e+00> : vector<8x128xf32>
    %17 = tpu.matmul %15, %16, %cst_14 {dimension_numbers = #tpu.dot_dimension_numbers<[1], [0], [0], [1], [0, 0, 1, 1], [], []>} : vector<8x128xf32>, vector<128x128xf32>, vector<8x128xf32> -> vector<8x128xf32>
    %18 = vector.broadcast %2 : vector<1x128xf32> to vector<8x128xf32>
    %19 = arith.addf %17, %18 : vector<8x128xf32>
    %20 = math.tanh %19 : vector<8x128xf32>
    %cst_15 = arith.constant 1.000000e+00 : f32
    %21 = vector.broadcast %cst_15 : f32 to vector<8x128xf32>
    %22 = arith.mulf %21, %20 : vector<8x128xf32>
    %c0_16 = arith.constant 0 : index
    %c0_17 = arith.constant 0 : index
    %23 = vector.load %arg6[%c0_16, %c0_17] : memref<8x128xf32, #tpu.memory_space<vmem>>, vector<8x128xf32>
    tpu.vector_store %arg6[%c0_16, %c0_17], %22 {strides = array<i32>} : memref<8x128xf32, #tpu.memory_space<vmem>>, vector<8x128xf32>,
    return
  }
  func.func @transform_0(%arg0: i32) -> (i32, i32) {
    %c0_i32 = arith.constant 0 : i32
    %c0_i32_0 = arith.constant 0 : i32
    return %arg0, %c0_i32 : i32, i32
  }
  func.func @transform_1(%arg0: i32) -> (i32, i32) {
    %c0_i32 = arith.constant 0 : i32
    %c0_i32_0 = arith.constant 0 : i32
    %c0_i32_1 = arith.constant 0 : i32
    return %c0_i32, %c0_i32_0 : i32, i32
  }
  func.func @transform_2(%arg0: i32) -> (i32, i32) {
    %c0_i32 = arith.constant 0 : i32
    %c0_i32_0 = arith.constant 0 : i32
    %c0_i32_1 = arith.constant 0 : i32
    return %c0_i32, %c0_i32_0 : i32, i32
  }
  func.func @transform_3(%arg0: i32) -> (i32, i32) {
    %c0_i32 = arith.constant 0 : i32
    %c0_i32_0 = arith.constant 0 : i32
    %c0_i32_1 = arith.constant 0 : i32
    return %c0_i32, %c0_i32_0 : i32, i32
  }
  func.func @transform_4(%arg0: i32) -> (i32, i32) {
    %c0_i32 = arith.constant 0 : i32
    %c0_i32_0 = arith.constant 0 : i32
    %c0_i32_1 = arith.constant 0 : i32
    return %c0_i32, %c0_i32_0 : i32, i32
  }
  func.func @transform_5(%arg0: i32) -> (i32, i32) {
    %c0_i32 = arith.constant 0 : i32
    %c0_i32_0 = arith.constant 0 : i32
    return %arg0, %c0_i32 : i32, i32
  }
}

</mosaic_0001>

<bundles_post_ra>
// kernel: tpu_custom_call.1
= control target key start
LH: loop header
LB: loop body
LE: loop exit
PB: predicated region body
PF: predicated region fallthrough
CT: control target
= control target key end

     0   :  { %10 = vsyncpa [#allocation3], 0  ;;  %s817_s0 = inlined_call_operand.hbm [shape: f32[2,16], index: 0, kind: input, shape index: {}]   ;;  %s818_s1 = inlined_call_operand.hbm [shape: f32[16,128], index: 1, kind: input, shape index: {}]   ;;  %s819_s2 = inlined_call_operand.hbm [shape: f32[128,128], index: 2, kind: input, shape index: {}]   ;;  %s820_s3 = inlined_call_operand.hbm [shape: f32[128,128], index: 3, kind: input, shape index: {}]   ;;  %s821_s4 = inlined_call_operand.vmem [shape: f32[3,128], index: 4, kind: input, shape index: {}]   ;;  %s822_s5 = inlined_call_operand.hbm [shape: f32[2,128], index: 5, kind: output, shape index: {}]  }
   0x1   :  { %11 = vsyncpa [#allocation6], 0 }
   0x2   :  { %12 = vsyncpa [#allocation9], 0 }
   0x3   :  { %13 = vsyncpa [#allocation4], 0 }
   0x4   :  { %18 = vsyncadd [#allocation3], 96  ;;  %s664_s18 = smov [#allocation5]   ;;  %s546_s22 = scalar_lea.hbm %s818_s1, 256 }
   0x5   :  { %s31_s19 = sshll.u32 %s664_s18, 4  ;;  %p547_p0 = scmp.ne.s32.totalorder %s818_s1, %s546_s22  ;;  %s32_s19 = int_to_ptr.vmem [resolvable:$true] %s31_s19 }
   0x6   :  { %p550_p1 = scmp.lt.u32.totalorder %s546_s22, %s818_s1 }
   0x8   :  { %p552_p2 = pnand %p550_p1, %p547_p0 }
   0xa   :  { %555 = shalt.err (!%p552_p2)
}
   0xb   :  { %s556_s27 = scalar_lea.vmem %s32_s19, 256  ;;  %p561_p4 = scmp.lt.s32.totalorder %s32_s19, %s32_s19 }
   0xc   :  { %p557_p3 = scmp.ne.s32.totalorder %s32_s19, %s556_s27  ;;  %p562_p5 = scmp.lt.s32.totalorder %s556_s27, %s556_s27 }
   0xe   :  { %p563_p6 = por %p562_p5, %p561_p4 }
  0x10   :  { %p564_p7 = pnand %p563_p6, %p557_p3 }
  0x12   :  { %567 = shalt.err (!%p564_p7)
}
  0x13   :  { %s665_s28 = smov 128   ;;  %s666_s29 = smov 8  }
  0x14   :  { %37 = dma.hbm_to_vmem [thread:$0]  %s818_s1, 256, %s32_s19, [#allocation6], %s665_s28, %s665_s28, %s666_s29  }
  0x15   :  { %s667_s7 = smov [#allocation2]   ;;  %s568_s11 = scalar_lea.hbm %s817_s0, 32 }
  0x16   :  { %s19_s8 = sshll.u32 %s667_s7, 4  ;;  %p569_p8 = scmp.ne.s32.totalorder %s817_s0, %s568_s11  ;;  %s20_s8 = int_to_ptr.vmem [resolvable:$true] %s19_s8 }
  0x17   :  { %p572_p9 = scmp.lt.u32.totalorder %s568_s11, %s817_s0 }
  0x19   :  { %p574_p10 = pnand %p572_p9, %p569_p8 }
  0x1b   :  { %577 = shalt.err (!%p574_p10)
}
  0x1c   :  { %s578_s16 = scalar_lea.vmem %s20_s8, 32  ;;  %s582_s1 = scalar_lea.vmem %s20_s8, 128 }
  0x1d   :  { %p579_p11 = scmp.ne.s32.totalorder %s20_s8, %s578_s16  ;;  %p583_p12 = scmp.lt.s32.totalorder %s20_s8, %s20_s8 }
  0x1e   :  { %p584_p13 = scmp.lt.s32.totalorder %s582_s1, %s578_s16 }
  0x20   :  { %p585_p0 = por %p584_p13, %p583_p12 }
  0x22   :  { %p586_p1 = pnand %p585_p0, %p579_p11 }
  0x24   :  { %589 = shalt.err (!%p586_p1)
}
  0x25   :  { %s668_s17 = smov 32   ;;  %s669_s18 = smov 2  }
  0x26   :  { %25 = dma.hbm_to_vmem [thread:$0]  %s817_s0, 32, %s20_s8, [#allocation3], %s668_s17, %s668_s17, %s669_s18  }
  0x27   :  { %s670_s21 = smov [#allocation7]   ;;  %s671_s23 = smov [#allocation8]  }
  0x28   :  { %s43_s22 = sshll.u32 %s670_s21, 4  ;;  %s55_s24 = sshll.u32 %s671_s23, 4  ;;  %s44_s22 = int_to_ptr.vmem [resolvable:$true] %s43_s22  ;;  %s736_s24 = int_to_ptr.vmem [resolvable:$true] %s55_s24 }
  0x29   :  { %s590_s27 = scalar_lea.hbm %s819_s2, 2048 }
  0x2a   :  { %p591_p2 = scmp.ne.s32.totalorder %s819_s2, %s590_s27  ;;  %p594_p3 = scmp.lt.u32.totalorder %s590_s27, %s819_s2 }
  0x2c   :  { %p596_p4 = pnand %p594_p3, %p591_p2 }
  0x2e   :  { %599 = shalt.err (!%p596_p4)
}
  0x2f   :  { %s600_s0 = scalar_lea.vmem %s44_s22, 2048  ;;  %p605_p6 = scmp.lt.s32.totalorder %s44_s22, %s44_s22 }
  0x30   :  { %p601_p5 = scmp.ne.s32.totalorder %s44_s22, %s600_s0  ;;  %p606_p7 = scmp.lt.s32.totalorder %s600_s0, %s600_s0 }
  0x32   :  { %p607_p8 = por %p606_p7, %p605_p6 }
  0x34   :  { %p608_p9 = pnand %p607_p8, %p601_p5 }
  0x36   :  { %611 = shalt.err (!%p608_p9)
}
  0x37   :  { %49 = dma.hbm_to_vmem [thread:$0]  %s819_s2, 2048, %s44_s22, [#allocation6], %s665_s28, %s665_s28, %s666_s29  }
  0x38   :  { %s612_s13 = scalar_lea.hbm %s820_s3, 2048 }
  0x39   :  { %p613_p10 = scmp.ne.s32.totalorder %s820_s3, %s612_s13  ;;  %p616_p11 = scmp.lt.u32.totalorder %s612_s13, %s820_s3 }
  0x3b   :  { %p618_p12 = pnand %p616_p11, %p613_p10 }
  0x3d   :  { %621 = shalt.err (!%p618_p12)
}
  0x3e   :  { %s622_s19 = scalar_lea.vmem %s736_s24, 2048  ;;  %p627_p0 = scmp.lt.s32.totalorder %s736_s24, %s736_s24 }
  0x3f   :  { %p623_p13 = scmp.ne.s32.totalorder %s736_s24, %s622_s19  ;;  %p628_p1 = scmp.lt.s32.totalorder %s622_s19, %s622_s19 }
  0x41   :  { %p629_p2 = por %p628_p1, %p627_p0 }
  0x43   :  { %p630_p3 = pnand %p629_p2, %p623_p13 }
  0x45   :  { %633 = shalt.err (!%p630_p3)
}
  0x46   :  { %61 = dma.hbm_to_vmem [thread:$0]  %s820_s3, 2048, %s736_s24, [#allocation9], %s665_s28, %s665_s28, %s666_s29  }
  0x47   :  { %656 = dma.done.wait [#allocation3], 128  }
  0x48   :  { %657 = vsyncadd [#allocation3], 4294967168 }
  0x49   :  { %658 = dma.done.wait [#allocation6], 2304  }
  0x4a   :  { %659 = vsyncadd [#allocation6], 4294964992 }
  0x4b   :  { %660 = dma.done.wait [#allocation9], 2048  }
  0x4c   :  { %661 = vsyncadd [#allocation9], 4294965248  ;;  %v672_v0 = vmov 0.0|0.0   ;;  %vm673_vm0 = vmmov 0   ;;  %v674_v1 = vmov 0.0   ;;  %v80_v2 = vld [vmem:[#allocation5] sm:$0xff] }
  0x4d   :  { %481 = vmatprep.subr.bf16.mxu0 %v672_v0  ;;  %408 = vmatprep.mubr.msk.f32.mxu0 %vm673_vm0, %v674_v1  ;;  %v81_v3 = vld [vmem:[#allocation5 + $0x8] sm:$0xff]  ;;  %v161_v5 = vld [vmem:[#allocation7] sm:$0xff]  ;;  %v162_v6 = vld [vmem:[#allocation7 + $0x8] sm:$0xff]  ;;  %vm86_vm1 = vcmask 130048  }
  0x4e   :  { %484 = vmatprep.subr.bf16.mxu1 %v672_v0  ;;  %443 = vmatprep.mubr.msk.f32.mxu1 %vm673_vm0, %v674_v1  ;;  %v482_v4 = vpack.c.bf16 %v81_v3, %v80_v2  ;;  %v163_v7 = vld [vmem:[#allocation7 + $0x10] sm:$0xff]  ;;  %v485_v8 = vpack.c.bf16 %v162_v6, %v161_v5  ;;  %v164_v9 = vld [vmem:[#allocation7 + $0x18] sm:$0xff]  ;;  %v79_v10 = vld [vmem:[#allocation2] sm:$0xff] }
  0x4f   :  { %v488_v11 = vpack.c.bf16 %v164_v9, %v163_v7  ;;  %v165_v12 = vld [vmem:[#allocation7 + $0x20] sm:$0xff]  ;;  %v166_v13 = vld [vmem:[#allocation7 + $0x28] sm:$0xff]  ;;  %v167_v15 = vld [vmem:[#allocation7 + $0x30] sm:$0xff] }
  0x50   :  { %483 = vmatpush3.bf16.msra.mxu0 %v482_v4  ;;  %486 = vmatpush3.bf16.msra.mxu1 %v485_v8  ;;  %v491_v14 = vpack.c.bf16 %v166_v13, %v165_v12  ;;  %v168_v16 = vld [vmem:[#allocation7 + $0x38] sm:$0xff]  ;;  %v169_v18 = vld [vmem:[#allocation7 + $0x40] sm:$0xff]  ;;  %v170_v19 = vld [vmem:[#allocation7 + $0x48] sm:$0xff] }
  0x51   :  { %508 = vmatprep.subr.bf16.mxu0 %v672_v0  ;;  %487 = vmatprep.subr.bf16.mxu1 %v672_v0  ;;  %v494_v17 = vpack.c.bf16 %v168_v16, %v167_v15  ;;  %v497_v20 = vpack.c.bf16 %v170_v19, %v169_v18  ;;  %v171_v21 = vld [vmem:[#allocation7 + $0x50] sm:$0xff]  ;;  %v172_v22 = vld [vmem:[#allocation7 + $0x58] sm:$0xff]  ;;  %v173_v24 = vld [vmem:[#allocation7 + $0x60] sm:$0xff] }
  0x52   :  { %v500_v23 = vpack.c.bf16 %v172_v22, %v171_v21  ;;  %v174_v25 = vld [vmem:[#allocation7 + $0x68] sm:$0xff]  ;;  %v175_v27 = vld [vmem:[#allocation7 + $0x70] sm:$0xff]  ;;  %v176_v28 = vld [vmem:[#allocation7 + $0x78] sm:$0xff] }
  0x53   :  { %409 = vmatmul.mubr.msk.f32.vlgmr.msra.gmra.mrb[0].mxu0 %vm86_vm1, %v79_v10  ;;  %v503_v26 = vpack.c.bf16 %v174_v25, %v173_v24  ;;  %v506_v29 = vpack.c.bf16 %v176_v28, %v175_v27  ;;  %v252_v30 = vld [vmem:[#allocation8] sm:$0xff]  ;;  %v253_v31 = vld [vmem:[#allocation8 + $0x8] sm:$0xff]  ;;  %v254_v32 = vld [vmem:[#allocation8 + $0x10] sm:$0xff] }
  0x54   :  { %478 = vmatprep.mubr.msk.f32.mxu0 %vm673_vm0, %v674_v1  ;;  %489 = vmatpush3.bf16.msra.mxu1 %v488_v11  ;;  %v509_v33 = vpack.c.bf16 %v253_v31, %v252_v30  ;;  %v255_v34 = vld [vmem:[#allocation8 + $0x18] sm:$0xff]  ;;  %v256_v36 = vld [vmem:[#allocation8 + $0x20] sm:$0xff]  ;;  %v257_v37 = vld [vmem:[#allocation8 + $0x28] sm:$0xff] }
  0x55   :  { %490 = vmatprep.subr.bf16.mxu1 %v672_v0  ;;  %v512_v35 = vpack.c.bf16 %v255_v34, %v254_v32  ;;  %v515_v38 = vpack.c.bf16 %v257_v37, %v256_v36  ;;  %v258_v39 = vld [vmem:[#allocation8 + $0x30] sm:$0xff]  ;;  %v259_v40 = vld [vmem:[#allocation8 + $0x38] sm:$0xff]  ;;  %v260_v42 = vld [vmem:[#allocation8 + $0x40] sm:$0xff] }
  0x56   :  { %510 = vmatpush3.bf16.msra.mxu0 %v509_v33  ;;  %v518_v41 = vpack.c.bf16 %v259_v40, %v258_v39  ;;  %v261_v43 = vld [vmem:[#allocation8 + $0x48] sm:$0xff]  ;;  %v262_v45 = vld [vmem:[#allocation8 + $0x50] sm:$0xff]  ;;  %v263_v46 = vld [vmem:[#allocation8 + $0x58] sm:$0xff] }
  0x57   :  { %511 = vmatprep.subr.bf16.mxu0 %v672_v0  ;;  %v521_v44 = vpack.c.bf16 %v261_v43, %v260_v42  ;;  %v524_v47 = vpack.c.bf16 %v263_v46, %v262_v45  ;;  %v264_v48 = vld [vmem:[#allocation8 + $0x60] sm:$0xff]  ;;  %v265_v49 = vld [vmem:[#allocation8 + $0x68] sm:$0xff]  ;;  %v266_v56 = vld [vmem:[#allocation8 + $0x70] sm:$0xff] }
  0x58   :  { %492 = vmatpush3.bf16.msra.mxu1 %v491_v14  ;;  %v527_v50 = vpack.c.bf16 %v265_v49, %v264_v48  ;;  %v363_v51 = vld [vmem:[%s821_s4] ss:$0 sm:$0xff]  ;;  %v267_v57 = vld [vmem:[#allocation8 + $0x78] sm:$0xff]  ;;  %v365_v59 = vld [vmem:[%s821_s4 + $0x1] ss:$0 sm:$0xff] }
  0x59   :  { %493 = vmatprep.subr.bf16.mxu1 %v672_v0  ;;  %v530_v58 = vpack.c.bf16 %v267_v57, %v266_v56 }
  0x5a   :  { %513 = vmatpush3.bf16.msra.mxu0 %v512_v35 }
  0x5b   :  { %514 = vmatprep.subr.bf16.mxu0 %v672_v0 }
  0x5c   :  { %495 = vmatpush3.bf16.msra.mxu1 %v494_v17 }
  0x5d   :  { %496 = vmatprep.subr.bf16.mxu1 %v672_v0 }
  0x5e   :  { %516 = vmatpush3.bf16.msra.mxu0 %v515_v38 }
  0x5f   :  { %517 = vmatprep.subr.bf16.mxu0 %v672_v0 }
  0x60   :  { %498 = vmatpush3.bf16.msra.mxu1 %v497_v20 }
  0x61   :  { %499 = vmatprep.subr.bf16.mxu1 %v672_v0 }
  0x62   :  { %519 = vmatpush3.bf16.msra.mxu0 %v518_v41 }
  0x63   :  { %520 = vmatprep.subr.bf16.mxu0 %v672_v0 }
  0x64   :  { %501 = vmatpush3.bf16.msra.mxu1 %v500_v23 }
  0x65   :  { %502 = vmatprep.subr.bf16.mxu1 %v672_v0 }
  0x66   :  { %522 = vmatpush3.bf16.msra.mxu0 %v521_v44 }
  0x67   :  { %523 = vmatprep.subr.bf16.mxu0 %v672_v0 }
  0x68   :  { %504 = vmatpush3.bf16.msra.mxu1 %v503_v26 }
  0x69   :  { %505 = vmatprep.subr.bf16.mxu1 %v672_v0 }
  0x6a   :  { %525 = vmatpush3.bf16.msra.mxu0 %v524_v47 }
  0x6b   :  { %526 = vmatprep.subr.bf16.mxu0 %v672_v0 }
  0x6c   :  { %507 = vmatpush3.bf16.msra.mxu1 %v506_v29 }
  0x6e   :  { %528 = vmatpush3.bf16.msra.mxu0 %v527_v50 }
  0x6f   :  { %529 = vmatprep.subr.bf16.mxu0 %v672_v0  ;;  %v366_v0 = vld [vmem:[%s821_s4 + $0x2] ss:$0 sm:$0xff] }
  0x72   :  { %531 = vmatpush3.bf16.msra.mxu0 %v530_v58 }
 0x126   :  { %v156_v52 = vpop.f32.mrb[0].mxu0 }
 0x127   :  { %v157_v53 = vadd.f32 %v363_v51, %v156_v52  ;;  %v410_v54 = vpop.f32.mrb[1].mxu0 }
 0x129   :  { %v160_v55 = vmax.f32 %v157_v53, 0.0 }
 0x12b   :  { %444 = vmatmul.mubr.f32.vlgmr.msra.gmra.mrb[0].mxu1 %v160_v55 }
 0x1fe   :  { %v247_v60 = vpop.f32.mrb[0].mxu1 }
 0x1ff   :  { %v248_v61 = vadd.f32 %v365_v59, %v247_v60  ;;  %v445_v62 = vpop.f32.mrb[1].mxu1 }
 0x201   :  { %v251_v63 = vmax.f32 %v248_v61, 0.0 }
 0x203   :  { %479 = vmatmul.mubr.f32.vlgmr.msra.gmra.mrb[2].mxu0 %v251_v63 }
 0x2d6   :  { %v338_v1 = vpop.f32.mrb[2].mxu0 }
 0x2d7   :  { %v339_v2 = vadd.f32 %v366_v0, %v338_v1  ;;  %v480_v3 = vpop.f32.mrb[3].mxu0 }
 0x2d9   :  { %544 = vtanh.f32 %v339_v2 }
 0x2e3   :  { %v545_v4 = vpop.eup %544 }
 0x2e4   :  { %343 = vst [vmem:[#allocation10] sm:$0xff] %v545_v4 }
 0x2e5   :  { %348 = vsyncadd [#allocation4], 96  ;;  %s675_s24 = smov [#allocation10]  }
 0x2e6   :  { %s349_s25 = sshll.u32 %s675_s24, 4  ;;  %s350_s25 = int_to_ptr.vmem [resolvable:$true] %s349_s25 }
 0x2e7   :  { %s634_s26 = scalar_lea.vmem %s350_s25, 32  ;;  %s638_s27 = scalar_lea.vmem %s350_s25, 128 }
 0x2e8   :  { %p635_p4 = scmp.ne.s32.totalorder %s350_s25, %s634_s26  ;;  %p639_p5 = scmp.lt.s32.totalorder %s350_s25, %s350_s25 }
 0x2e9   :  { %p640_p6 = scmp.lt.s32.totalorder %s638_s27, %s634_s26 }
 0x2eb   :  { %p641_p7 = por %p640_p6, %p639_p5 }
 0x2ed   :  { %p642_p8 = pnand %p641_p7, %p635_p4 }
 0x2ef   :  { %645 = shalt.err (!%p642_p8)
}
 0x2f0   :  { %s646_s6 = scalar_lea.hbm %s822_s5, 32 }
 0x2f1   :  { %p647_p9 = scmp.ne.s32.totalorder %s822_s5, %s646_s6  ;;  %p650_p10 = scmp.lt.u32.totalorder %s646_s6, %s822_s5 }
 0x2f3   :  { %p652_p11 = pnand %p650_p10, %p647_p9 }
 0x2f5   :  { %655 = shalt.err (!%p652_p11)
}
 0x2f6   :  { %355 = dma.vmem_to_hbm [thread:$0]  %s350_s25, 32, %s822_s5, [#allocation4], %s668_s17, %s668_s17, %s669_s18  }
 0x2f7   :  { %662 = dma.done.wait [#allocation4], 128  }
 0x2f8   :  { %663 = vsyncadd [#allocation4], 4294967168 }
 0x2f9   :  { %359 = vsyncpa [#allocation3], 1 }
 0x2fa   :  { %360 = vsyncpa [#allocation6], 1 }
 0x2fb   :  { %361 = vsyncpa [#allocation9], 1 }
 0x2fc   :  { %362 = vsyncpa [#allocation4], 1 }

</bundles_post_ra>
